<compile_context>
chip_gen: v7x
topology: tpu7x:2x2x1
jax: 0.10.0
libtpu: 0.0.40
codegen_flags: <defaults>
</compile_context>

<pallas_src>
import jax
import jax.numpy as jnp
from jax.experimental import pallas as pl
from jax.experimental.pallas import tpu as pltpu


def _round_up(x, m):
    return ((x + m - 1) // m) * m


# -----------------------------------------------------------------------------
# Kernel: fully fused 3-layer MLP.
#   - bf16 operands feed the MXU, accumulation / bias / ReLU are f32.
#   - x arrives as f32 (unpadded Cin) and is cast in-kernel.
#   - only the real Cout columns are stored (o_ref's last dim is unpadded).
# -----------------------------------------------------------------------------
def mlp_kernel(x_ref, w1_ref, b1_ref, w2_ref, b2_ref, w3_ref, b3_ref, o_ref):
    cdt = w1_ref.dtype                      # compute (MXU) dtype, e.g. bf16
    x = x_ref[...].astype(cdt)              # cast here, not in the wrapper
    h = jnp.dot(x, w1_ref[...], preferred_element_type=jnp.float32)
    h = jnp.maximum(h + b1_ref[...], 0.0)
    h = jnp.dot(h.astype(cdt), w2_ref[...], preferred_element_type=jnp.float32)
    h = jnp.maximum(h + b2_ref[...], 0.0)
    out = jnp.dot(h.astype(cdt), w3_ref[...], preferred_element_type=jnp.float32)
    cout = o_ref.shape[-1]                  # real output channels (static)
    o_ref[...] = (out[:, :cout] + b3_ref[...]).astype(o_ref.dtype)


# -----------------------------------------------------------------------------
# One-time parameter preparation (pad + cast).  Call once; reuse every forward.
#   w1: [Cin,  Ch_p]  bf16     b1: [1, Ch_p]  f32
#   w2: [Ch_p, Ch_p]  bf16     b2: [1, Ch_p]  f32
#   w3: [Ch_p, Cout_p] bf16    b3: [1, Cout]  f32   (bias / output stay unpadded)
# Zero padding is numerically inert: padded hidden columns get bias 0 and
# relu(0) = 0, and the padded rows of the next weight matrix are zero.
# -----------------------------------------------------------------------------
def prepare_params(params, *, compute_dtype=jnp.bfloat16):
    w1 = jnp.asarray(params["w1"], jnp.float32)
    w2 = jnp.asarray(params["w2"], jnp.float32)
    w3 = jnp.asarray(params["w3"], jnp.float32)
    b1 = jnp.asarray(params["b1"], jnp.float32).reshape(1, -1)
    b2 = jnp.asarray(params["b2"], jnp.float32).reshape(1, -1)
    b3 = jnp.asarray(params["b3"], jnp.float32).reshape(1, -1)

    cin, ch = w1.shape
    cout = w3.shape[1]
    ch_p = _round_up(ch, 128)
    cout_p = _round_up(cout, 128)

    def pad_cols(a, cols, dtype):
        return jnp.pad(a, ((0, 0), (0, cols - a.shape[1]))).astype(dtype)

    return {
        "w1": pad_cols(w1, ch_p, compute_dtype),                              # [Cin, Ch_p]
        "b1": pad_cols(b1, ch_p, jnp.float32),                                # [1, Ch_p]
        "w2": jnp.pad(w2, ((0, ch_p - ch), (0, ch_p - ch))).astype(compute_dtype),
        "b2": pad_cols(b2, ch_p, jnp.float32),
        "w3": jnp.pad(w3, ((0, ch_p - ch), (0, cout_p - cout))).astype(compute_dtype),
        "b3": b3,                                                             # [1, Cout] f32
        "in_channels": cin,
        "out_channels": cout,
    }


def _choose_tm(n):
    """Row tile: enough grid steps for DMA/compute overlap and dual-TC (v7x)
    sharding (target ~8 steps, >=4 per core), but 128..1024 rows so per-step
    overhead is amortized on v5e/v6e."""
    if n <= 128:
        return _round_up(n, 8)
    tm = _round_up(pl.cdiv(n, 8), 128)
    return max(128, min(1024, tm))


def _vmem_estimate_bytes(tm, cin, ch_p, cout_p, cout, w_itemsize, weight_buffers):
    """Rough (generous) VMEM footprint of all pipeline buffers + live values."""
    f32 = 4
    lane = lambda c: _round_up(c, 128)
    x_bufs = 2 * tm * lane(cin) * f32                      # double-buffered x tile
    o_bufs = 2 * tm * lane(cout) * f32                     # double-buffered out tile
    w_bufs = weight_buffers * w_itemsize * (
        _round_up(cin, 16) * ch_p + ch_p * ch_p + ch_p * cout_p)
    b_bufs = 2 * f32 * 8 * (2 * ch_p + lane(cout))
    h_live = 2 * tm * ch_p * f32                           # intermediate activations
    return x_bufs + o_bufs + w_bufs + b_bufs + h_live


def discriminator_forward(x, prepared, *, tm=None, vmem_limit_bytes=None):
    """x: [N, in_channels] f32; prepared: output of prepare_params().
    Returns [N, out_channels] f32 = lin3(relu(lin2(relu(lin1(x)))))
    with bf16 MXU operands / f32 accumulation."""
    N, cin = x.shape
    assert cin == prepared["in_channels"], "x feature dim mismatch"
    cout = prepared["out_channels"]
    w1, b1 = prepared["w1"], prepared["b1"]
    w2, b2 = prepared["w2"], prepared["b2"]
    w3, b3 = prepared["w3"], prepared["b3"]
    ch_p = w1.shape[1]
    cout_p = w3.shape[1]

    if tm is None:
        tm = _choose_tm(N)
    tm = max(8, _round_up(min(tm, _round_up(N, 8)), 8))
    n_p = _round_up(N, tm)
    x_in = x if n_p == N else jnp.pad(x, ((0, n_p - N), (0, 0)))  # rows only, rare
    grid = (n_p // tm,)

    # Grid-invariant weight blocks are never re-fetched; at production hidden
    # dims, single-buffer them (pl.Buffered(1)) so e.g. a 32 MiB bf16 W2 is not
    # doubled against v7x's 64 MiB VMEM.  Small demo weights keep the default
    # (proven) double-buffered path.
    w_itemsize = jnp.dtype(w1.dtype).itemsize
    weight_bytes = (w1.size + w2.size + w3.size) * w_itemsize
    big_weights = weight_bytes >= (8 << 20)
    w_mode = pl.Buffered(1) if big_weights else None

    if vmem_limit_bytes is None:
        est = _vmem_estimate_bytes(tm, cin, ch_p, cout_p, cout, w_itemsize,
                                   1 if big_weights else 2)
        vmem_limit_bytes = min(48 << 20, est + (8 << 20))  # footprint + headroom

    flops = 2 * n_p * (cin * ch_p + ch_p * ch_p + ch_p * cout_p)
    bytes_accessed = (
        n_p * cin * 4                                   # x read (f32, unpadded)
        + weight_bytes
        + (b1.size + b2.size + b3.size) * 4
        + n_p * cout * 4                                # output write (f32, unpadded)
    )

    out = pl.pallas_call(
        mlp_kernel,
        out_shape=jax.ShapeDtypeStruct((n_p, cout), jnp.float32),
        grid_spec=pltpu.PrefetchScalarGridSpec(
            num_scalar_prefetch=0,
            grid=grid,
            in_specs=[
                # x: f32, column-unpadded, tiled over the batch dimension.
                pl.BlockSpec((tm, cin), lambda i: (i, 0)),
                # weights / biases: full arrays, resident for every grid step.
                pl.BlockSpec((cin, ch_p), lambda i: (0, 0), pipeline_mode=w_mode),
                pl.BlockSpec((1, ch_p), lambda i: (0, 0)),
                pl.BlockSpec((ch_p, ch_p), lambda i: (0, 0), pipeline_mode=w_mode),
                pl.BlockSpec((1, ch_p), lambda i: (0, 0)),
                pl.BlockSpec((ch_p, cout_p), lambda i: (0, 0), pipeline_mode=w_mode),
                pl.BlockSpec((1, cout), lambda i: (0, 0)),
            ],
            out_specs=pl.BlockSpec((tm, cout), lambda i: (i, 0)),
        ),
        compiler_params=pltpu.CompilerParams(
            dimension_semantics=("parallel",),
            vmem_limit_bytes=int(vmem_limit_bytes),
        ),
        cost_estimate=pl.CostEstimate(
            flops=int(flops), transcendentals=0, bytes_accessed=int(bytes_accessed)
        ),
    )(x_in, w1, b1, w2, b2, w3, b3)

    return out if n_p == N else out[:N]


def init_params(key, in_channels, hidden_channels, out_channels):
    """Deterministic synthetic params (torch.nn.Linear shapes, stored transposed)."""
    ks = jax.random.split(key, 6)

    def linear(kw, kb, fan_in, fan_out):
        bound = 1.0 / jnp.sqrt(fan_in)          # matches PyTorch Linear init scale
        w = jax.random.uniform(kw, (fan_in, fan_out), jnp.float32, -bound, bound)
        b = jax.random.uniform(kb, (1, fan_out), jnp.float32, -bound, bound)
        return w, b

    w1, b1 = linear(ks[0], ks[1], in_channels, hidden_channels)
    w2, b2 = linear(ks[2], ks[3], hidden_channels, hidden_channels)
    w3, b3 = linear(ks[4], ks[5], hidden_channels, out_channels)
    return {"w1": w1, "b1": b1, "w2": w2, "b2": b2, "w3": w3, "b3": b3}


def reference_forward(x, p, matmul_dtype=jnp.float32):
    """Pure-JAX reference. matmul_dtype=bf16 mirrors the kernel's MXU precision."""
    def dot(a, b):
        return jnp.dot(a.astype(matmul_dtype), b.astype(matmul_dtype),
                       preferred_element_type=jnp.float32)
    h = jnp.maximum(dot(x, p["w1"]) + p["b1"], 0.0)
    h = jnp.maximum(dot(h, p["w2"]) + p["b2"], 0.0)
    return dot(h, p["w3"]) + p["b3"]


if __name__ == "__main__":
    key = jax.random.PRNGKey(0)
    k_x, k_p = jax.random.split(key)

    # Small but MXU-meaningful shapes: tm=128 chosen automatically -> grid=(4,).
    N, Cin, Ch, Cout = 512, 32, 64, 16
    x = jax.random.normal(k_x, (N, Cin), jnp.float32)
    raw_params = init_params(k_p, Cin, Ch, Cout)

    # One-time pad + bf16 cast (outside the per-call path).
    prepared = prepare_params(raw_params)

    out = discriminator_forward(x, prepared)
    out = jax.block_until_ready(out)
    assert out.shape == (N, Cout)

    # Tight check against a precision-matched (bf16 operand / f32 accum) reference.
    ref_bf16 = reference_forward(x, raw_params, matmul_dtype=jnp.bfloat16)
    assert jnp.allclose(out, ref_bf16, atol=2e-3, rtol=2e-3), "mismatch vs bf16 reference"

    # Loose sanity check against the full-f32 reference (bf16 rounding tolerance).
    ref_f32 = reference_forward(x, raw_params, matmul_dtype=jnp.float32)
    assert jnp.allclose(out, ref_f32, atol=1e-1, rtol=1e-1), "mismatch vs f32 reference"

    print("KERNEL_OK")
</pallas_src>

<mosaic_0001>
module attributes {stable_mosaic.version = 11 : i64} {
  func.func @mlp_kernel(%arg0: i32, %arg1: memref<128x32xf32, #tpu.memory_space<vmem>>, %arg2: memref<32x128xbf16, #tpu.memory_space<vmem>>, %arg3: memref<1x128xf32, #tpu.memory_space<vmem>>, %arg4: memref<128x128xbf16, #tpu.memory_space<vmem>>, %arg5: memref<1x128xf32, #tpu.memory_space<vmem>>, %arg6: memref<128x128xbf16, #tpu.memory_space<vmem>>, %arg7: memref<1x16xf32, #tpu.memory_space<vmem>>, %arg8: memref<128x16xf32, #tpu.memory_space<vmem>>) attributes {dimension_semantics = [#tpu.dimension_semantics<parallel>], iteration_bounds = array<i64: 4>, scalar_prefetch = 0 : i64, scratch_operands = 0 : i64, tpu.core_type = #tpu.core_type<tc>, window_params = [{transform_indices = @transform_0, window_bounds = array<i64: 128, 32>}, {pipeline_mode = #tpu.pipeline_mode<synchronous>, transform_indices = @transform_1, window_bounds = array<i64: 32, 128>}, {pipeline_mode = #tpu.pipeline_mode<synchronous>, transform_indices = @transform_2, window_bounds = array<i64: 1, 128>}, {pipeline_mode = #tpu.pipeline_mode<synchronous>, transform_indices = @transform_3, window_bounds = array<i64: 128, 128>}, {pipeline_mode = #tpu.pipeline_mode<synchronous>, transform_indices = @transform_4, window_bounds = array<i64: 1, 128>}, {pipeline_mode = #tpu.pipeline_mode<synchronous>, transform_indices = @transform_5, window_bounds = array<i64: 128, 128>}, {pipeline_mode = #tpu.pipeline_mode<synchronous>, transform_indices = @transform_6, window_bounds = array<i64: 1, 16>}, {transform_indices = @transform_7, window_bounds = array<i64: 128, 16>}]} {
    %c0 = arith.constant 0 : index
    %c0_0 = arith.constant 0 : index
    %0 = vector.load %arg1[%c0, %c0_0] : memref<128x32xf32, #tpu.memory_space<vmem>>, vector<128x32xf32>
    %1 = arith.truncf %0 : vector<128x32xf32> to vector<128x32xbf16>
    %c0_1 = arith.constant 0 : index
    %c0_2 = arith.constant 0 : index
    %2 = vector.load %arg2[%c0_1, %c0_2] : memref<32x128xbf16, #tpu.memory_space<vmem>>, vector<32x128xbf16>
    %cst = arith.constant dense<0.000000e+00> : vector<128x128xf32>
    %3 = tpu.matmul %1, %2, %cst {dimension_numbers = #tpu.dot_dimension_numbers<[1], [0], [0], [1], [0, 0, 1, 1], [], []>} : vector<128x32xbf16>, vector<32x128xbf16>, vector<128x128xf32> -> vector<128x128xf32>
    %c0_3 = arith.constant 0 : index
    %c0_4 = arith.constant 0 : index
    %4 = vector.load %arg3[%c0_3, %c0_4] : memref<1x128xf32, #tpu.memory_space<vmem>>, vector<1x128xf32>
    %5 = vector.broadcast %4 : vector<1x128xf32> to vector<128x128xf32>
    %6 = arith.addf %3, %5 : vector<128x128xf32>
    %cst_5 = arith.constant 0.000000e+00 : f32
    %7 = vector.broadcast %cst_5 : f32 to vector<128x128xf32>
    %8 = arith.maximumf %6, %7 : vector<128x128xf32>
    %9 = arith.truncf %8 : vector<128x128xf32> to vector<128x128xbf16>
    %c0_6 = arith.constant 0 : index
    %c0_7 = arith.constant 0 : index
    %10 = vector.load %arg4[%c0_6, %c0_7] : memref<128x128xbf16, #tpu.memory_space<vmem>>, vector<128x128xbf16>
    %cst_8 = arith.constant dense<0.000000e+00> : vector<128x128xf32>
    %11 = tpu.matmul %9, %10, %cst_8 {dimension_numbers = #tpu.dot_dimension_numbers<[1], [0], [0], [1], [0, 0, 1, 1], [], []>} : vector<128x128xbf16>, vector<128x128xbf16>, vector<128x128xf32> -> vector<128x128xf32>
    %c0_9 = arith.constant 0 : index
    %c0_10 = arith.constant 0 : index
    %12 = vector.load %arg5[%c0_9, %c0_10] : memref<1x128xf32, #tpu.memory_space<vmem>>, vector<1x128xf32>
    %13 = vector.broadcast %12 : vector<1x128xf32> to vector<128x128xf32>
    %14 = arith.addf %11, %13 : vector<128x128xf32>
    %cst_11 = arith.constant 0.000000e+00 : f32
    %15 = vector.broadcast %cst_11 : f32 to vector<128x128xf32>
    %16 = arith.maximumf %14, %15 : vector<128x128xf32>
    %17 = arith.truncf %16 : vector<128x128xf32> to vector<128x128xbf16>
    %c0_12 = arith.constant 0 : index
    %c0_13 = arith.constant 0 : index
    %18 = vector.load %arg6[%c0_12, %c0_13] : memref<128x128xbf16, #tpu.memory_space<vmem>>, vector<128x128xbf16>
    %cst_14 = arith.constant dense<0.000000e+00> : vector<128x128xf32>
    %19 = tpu.matmul %17, %18, %cst_14 {dimension_numbers = #tpu.dot_dimension_numbers<[1], [0], [0], [1], [0, 0, 1, 1], [], []>} : vector<128x128xbf16>, vector<128x128xbf16>, vector<128x128xf32> -> vector<128x128xf32>
    %20 = vector.extract_strided_slice %19 {offsets = [0, 0], sizes = [128, 16], strides = [1, 1]} : vector<128x128xf32> to vector<128x16xf32>
    %c0_15 = arith.constant 0 : index
    %c0_16 = arith.constant 0 : index
    %21 = vector.load %arg7[%c0_15, %c0_16] : memref<1x16xf32, #tpu.memory_space<vmem>>, vector<1x16xf32>
    %22 = vector.broadcast %21 : vector<1x16xf32> to vector<128x16xf32>
    %23 = arith.addf %20, %22 : vector<128x16xf32>
    %c0_17 = arith.constant 0 : index
    %c0_18 = arith.constant 0 : index
    %24 = vector.load %arg8[%c0_17, %c0_18] : memref<128x16xf32, #tpu.memory_space<vmem>>, vector<128x16xf32>
    tpu.vector_store %arg8[%c0_17, %c0_18], %23 {strides = array<i32>} : memref<128x16xf32, #tpu.memory_space<vmem>>, vector<128x16xf32>,
    return
  }
  func.func @transform_0(%arg0: i32) -> (i32, i32) {
    %c0_i32 = arith.constant 0 : i32
    %c0_i32_0 = arith.constant 0 : i32
    return %arg0, %c0_i32 : i32, i32
  }
  func.func @transform_1(%arg0: i32) -> (i32, i32) {
    %c0_i32 = arith.constant 0 : i32
    %c0_i32_0 = arith.constant 0 : i32
    %c0_i32_1 = arith.constant 0 : i32
    return %c0_i32, %c0_i32_0 : i32, i32
  }
  func.func @transform_2(%arg0: i32) -> (i32, i32) {
    %c0_i32 = arith.constant 0 : i32
    %c0_i32_0 = arith.constant 0 : i32
    %c0_i32_1 = arith.constant 0 : i32
    return %c0_i32, %c0_i32_0 : i32, i32
  }
  func.func @transform_3(%arg0: i32) -> (i32, i32) {
    %c0_i32 = arith.constant 0 : i32
    %c0_i32_0 = arith.constant 0 : i32
    %c0_i32_1 = arith.constant 0 : i32
    return %c0_i32, %c0_i32_0 : i32, i32
  }
  func.func @transform_4(%arg0: i32) -> (i32, i32) {
    %c0_i32 = arith.constant 0 : i32
    %c0_i32_0 = arith.constant 0 : i32
    %c0_i32_1 = arith.constant 0 : i32
    return %c0_i32, %c0_i32_0 : i32, i32
  }
  func.func @transform_5(%arg0: i32) -> (i32, i32) {
    %c0_i32 = arith.constant 0 : i32
    %c0_i32_0 = arith.constant 0 : i32
    %c0_i32_1 = arith.constant 0 : i32
    return %c0_i32, %c0_i32_0 : i32, i32
  }
  func.func @transform_6(%arg0: i32) -> (i32, i32) {
    %c0_i32 = arith.constant 0 : i32
    %c0_i32_0 = arith.constant 0 : i32
    %c0_i32_1 = arith.constant 0 : i32
    return %c0_i32, %c0_i32_0 : i32, i32
  }
  func.func @transform_7(%arg0: i32) -> (i32, i32) {
    %c0_i32 = arith.constant 0 : i32
    %c0_i32_0 = arith.constant 0 : i32
    return %arg0, %c0_i32 : i32, i32
  }
}

</mosaic_0001>

<bundles_post_ra>
// kernel: tpu_custom_call.1
= control target key start
LH: loop header
LB: loop body
LE: loop exit
PB: predicated region body
PF: predicated region fallthrough
CT: control target
= control target key end

     0   :  { %s1165_s24 = smov 0   ;;  %s1312_s0 = inlined_call_operand.vmem [shape: f32[512,32], index: 0, kind: input, shape index: {}]   ;;  %s1313_s1 = inlined_call_operand.vmem [shape: bf16[32,128], index: 1, kind: input, shape index: {}]   ;;  %s1314_s2 = inlined_call_operand.vmem [shape: f32[1,128], index: 2, kind: input, shape index: {}]   ;;  %s1315_s3 = inlined_call_operand.vmem [shape: bf16[128,128], index: 3, kind: input, shape index: {}]   ;;  %s1316_s4 = inlined_call_operand.vmem [shape: f32[1,128], index: 4, kind: input, shape index: {}]   ;;  %s1317_s5 = inlined_call_operand.vmem [shape: bf16[128,128], index: 5, kind: input, shape index: {}]   ;;  %s1318_s6 = inlined_call_operand.vmem [shape: f32[1,16], index: 6, kind: input, shape index: {}]   ;;  %s1319_s7 = inlined_call_operand.vmem [shape: f32[512,16], index: 7, kind: output, shape index: {}]  }
   0x1 LB: > { %s925_s25 = sadd.s32 4294967295, %s1123_s24   ;;  %p929_p0 = scmp.ge.s32.totalorder %s1123_s24, 1  ;;  %s1123_s24 = sphi %s1165_s24, %s17_s24  }
   0x2   : > { %p238_p1 = scmp.lt.s32.totalorder %s1123_s24, 5 }
   0x4   : > { %p239_p2 = pnand %p929_p0, %p238_p1 }
   0x5   : > { %v1099_v0 = vld [vmem:[%s1313_s1] sm:$0xff] (!%p239_p2)   ;;  %s930_s28 = sshll.u32 (!%p239_p2), %s925_s25, 4  ;;  %v1100_v1 = vld [vmem:[%s1313_s1 + $0x8] sm:$0xff] (!%p239_p2)   ;;  %v1103_v4 = vld [vmem:[%s1315_s3 + $0x10] sm:$0xff] (!%p239_p2)   ;;  %vm330_vm0 = vcmask (!%p239_p2), 261120   ;;  %vm852_vm1 = vcmask (!%p239_p2), 130048  }
   0x6   : > { %242 = sbr.rel (%p239_p2) target bundleno = 706 (0x2c2), region = 48  ;;  %p271_p3 = scmp.lt.s32.totalorder (!%p239_p2), %s930_s28, 63  ;;  %1007 = vmatprep.subr.bf16.mxu0 (!%p239_p2), %v1099_v0  ;;  %v1101_v2 = vld [vmem:[%s1315_s3] sm:$0xff] (!%p239_p2)   ;;  %v1102_v3 = vld [vmem:[%s1315_s3 + $0x8] sm:$0xff] (!%p239_p2)   ;;  %v1104_v14 = vld [vmem:[%s1315_s3 + $0x18] sm:$0xff] (!%p239_p2)  }
   0x7   : > { %1008 = vmatpush3.bf16.msra.mxu0 (!%p239_p2), %v1099_v0  ;;  %1027 = vmatprep.subr.bf16.mxu1 (!%p239_p2), %v1101_v2  ;;  %v1105_v18 = vld [vmem:[%s1315_s3 + $0x20] sm:$0xff] (!%p239_p2)   ;;  %v1106_v22 = vld [vmem:[%s1315_s3 + $0x28] sm:$0xff] (!%p239_p2)   ;;  %v1107_v32 = vld [vmem:[%s1315_s3 + $0x30] sm:$0xff] (!%p239_p2)  }
   0x8   : > { %1009 = vmatprep.subr.bf16.mxu0 (!%p239_p2), %v1100_v1  ;;  %1028 = vmatpush3.bf16.msra.mxu1 (!%p239_p2), %v1101_v2  ;;  %v1108_v33 = vld [vmem:[%s1315_s3 + $0x38] sm:$0xff] (!%p239_p2)   ;;  %v1109_v34 = vld [vmem:[%s1317_s5] sm:$0xff] (!%p239_p2)   ;;  %v1110_v35 = vld [vmem:[%s1317_s5 + $0x8] sm:$0xff] (!%p239_p2)  }
   0x9   : > { %1029 = vmatprep.subr.bf16.mxu1 (!%p239_p2), %v1102_v3  ;;  %v1111_v36 = vld [vmem:[%s1317_s5 + $0x10] sm:$0xff] (!%p239_p2)   ;;  %v1112_v37 = vld [vmem:[%s1317_s5 + $0x18] sm:$0xff] (!%p239_p2)   ;;  %v1113_v38 = vld [vmem:[%s1317_s5 + $0x20] sm:$0xff] (!%p239_p2)  }
   0xa   : > { %v1114_v39 = vld [vmem:[%s1317_s5 + $0x28] sm:$0xff] (!%p239_p2)   ;;  %v934_v40 = vld [vmem:[%s1314_s2] ss:$0 sm:$0xff] (!%p239_p2) }
   0xb   : > { %1010 = vmatpush3.bf16.msra.mxu0 (!%p239_p2), %v1100_v1 }
   0xc   : > { %1030 = vmatpush3.bf16.msra.mxu1 (!%p239_p2), %v1102_v3  ;;  %1059 = vmatprep.subr.bf16.mxu0 (!%p239_p2), %v1109_v34 }
   0xd   : > { %s1321_s28 = smov (!%p271_p3, %s930_s28), 63  ;;  %1031 = vmatprep.subr.bf16.mxu1 %v1103_v4 }
   0xe   : > { %s931_s12 = sshll.u32 %s1321_s28, 3 }
   0xf   : > { %s1193_s15 = scalar_lea.vmem %s1312_s0, %s931_s12  ;;  %s1275_s11 = scalar_lea.vmem %s1319_s7, %s931_s12 }
  0x10   : > { %v283_v5 = vld [vmem:[%s1193_s15] sm:$0xff]  ;;  %v284_v6 = vld [vmem:[%s1193_s15 + $0x8] sm:$0xff]  ;;  %v285_v7 = vld [vmem:[%s1193_s15 + $0x10] sm:$0xff]  ;;  %1032 = vmatpush3.bf16.msra.mxu1 %v1103_v4 }
  0x11   : > { %v299_v8 = vpack.c.bf16 %v284_v6, %v283_v5  ;;  %v286_v9 = vld [vmem:[%s1193_s15 + $0x18] sm:$0xff]  ;;  %v287_v10 = vld [vmem:[%s1193_s15 + $0x20] sm:$0xff]  ;;  %v288_v11 = vld [vmem:[%s1193_s15 + $0x28] sm:$0xff]  ;;  %1033 = vmatprep.subr.bf16.mxu1 %v1104_v14 }
  0x12   : > { %v300_v12 = vpack.c.bf16 %v286_v9, %v285_v7  ;;  %v301_v13 = vpack.c.bf16 %v288_v11, %v287_v10  ;;  %v289_v15 = vld [vmem:[%s1193_s15 + $0x30] sm:$0xff]  ;;  %v290_v16 = vld [vmem:[%s1193_s15 + $0x38] sm:$0xff]  ;;  %v291_v17 = vld [vmem:[%s1193_s15 + $0x40] sm:$0xff] }
  0x13   : > { %1011 = vmatprep.mubr.msk.bf16.mxu0 %vm330_vm0, %v299_v8  ;;  %v292_v19 = vld [vmem:[%s1193_s15 + $0x48] sm:$0xff]  ;;  %v302_v20 = vpack.c.bf16 %v290_v16, %v289_v15  ;;  %v293_v23 = vld [vmem:[%s1193_s15 + $0x50] sm:$0xff]  ;;  %v294_v24 = vld [vmem:[%s1193_s15 + $0x58] sm:$0xff] }
  0x14   : > { %1012 = vmatmul.mubr.msk.bf16.vlgmr.msra.gmra.mrb[0].mxu0 %vm330_vm0, %v300_v12  ;;  %v303_v21 = vpack.c.bf16 %v292_v19, %v291_v17  ;;  %1034 = vmatpush3.bf16.msra.mxu1 %v1104_v14  ;;  %v295_v25 = vld [vmem:[%s1193_s15 + $0x60] sm:$0xff]  ;;  %v296_v26 = vld [vmem:[%s1193_s15 + $0x68] sm:$0xff]  ;;  %v304_v27 = vpack.c.bf16 %v294_v24, %v293_v23  ;;  %v297_v29 = vld [vmem:[%s1193_s15 + $0x70] sm:$0xff] }
  0x15   : > { %1015 = vmatprep.mubr.msk.bf16.mxu0 %vm330_vm0, %v301_v13  ;;  %1035 = vmatprep.subr.bf16.mxu1 %v1105_v18  ;;  %v305_v28 = vpack.c.bf16 %v296_v26, %v295_v25  ;;  %v298_v30 = vld [vmem:[%s1193_s15 + $0x78] sm:$0xff] }
  0x16   : > { %v306_v31 = vpack.c.bf16 %v298_v30, %v297_v29  ;;  %1060 = vmatpush3.bf16.msra.mxu0 %v1109_v34  ;;  %v1116_v34 = vld [vmem:[%s1317_s5 + $0x38] sm:$0xff]  }
  0x17   : > { %1061 = vmatprep.subr.bf16.mxu0 %v1110_v35 }
  0x18   : > { %1036 = vmatpush3.bf16.msra.mxu1 %v1105_v18 }
  0x19   : > { %1037 = vmatprep.subr.bf16.mxu1 %v1106_v22 }
  0x1a   : > { %1062 = vmatpush3.bf16.msra.mxu0 %v1110_v35  ;;  %v945_v35 = vld [vmem:[%s1316_s4] ss:$0 sm:$0xff] }
  0x1b   : > { %1063 = vmatprep.subr.bf16.mxu0 %v1111_v36 }
  0x1c   : > { %1016 = vmatmul.mubr.msk.bf16.gmra.mrb[4].mxu0 %vm330_vm0, %v302_v20  ;;  %1038 = vmatpush3.bf16.msra.mxu1 %v1106_v22 }
  0x1d   : > { %1019 = vmatprep.mubr.msk.bf16.mxu0 %vm330_vm0, %v303_v21  ;;  %1039 = vmatprep.subr.bf16.mxu1 %v1107_v32 }
  0x1e   : > { %1064 = vmatpush3.bf16.msra.mxu0 %v1111_v36 }
  0x1f   : > { %1065 = vmatprep.subr.bf16.mxu0 %v1112_v37 }
  0x20   : > { %1040 = vmatpush3.bf16.msra.mxu1 %v1107_v32 }
  0x21   : > { %1041 = vmatprep.subr.bf16.mxu1 %v1108_v33 }
  0x22   : > { %1066 = vmatpush3.bf16.msra.mxu0 %v1112_v37 }
  0x23   : > { %1067 = vmatprep.subr.bf16.mxu0 %v1113_v38 }
  0x24   : > { %1020 = vmatmul.mubr.msk.bf16.gmra.mrb[8].mxu0 %vm330_vm0, %v304_v27  ;;  %1042 = vmatpush3.bf16.msra.mxu1 %v1108_v33  ;;  %v1115_v33 = vld [vmem:[%s1317_s5 + $0x30] sm:$0xff]  }
  0x25   : > { %1023 = vmatprep.mubr.msk.bf16.mxu0 %vm330_vm0, %v305_v28 }
  0x26   : > { %1068 = vmatpush3.bf16.msra.mxu0 %v1113_v38 }
  0x27   : > { %1069 = vmatprep.subr.bf16.mxu0 %v1114_v39 }
  0x2a   : > { %1070 = vmatpush3.bf16.msra.mxu0 %v1114_v39 }
  0x2b   : > { %1071 = vmatprep.subr.bf16.mxu0 %v1115_v33 }
  0x2c   : > { %1024 = vmatmul.mubr.msk.bf16.gmra.mrb[12].mxu0 %vm330_vm0, %v306_v31 }
  0x2e   : > { %1072 = vmatpush3.bf16.msra.mxu0 %v1115_v33 }
  0x2f   : > { %1073 = vmatprep.subr.bf16.mxu0 %v1116_v34 }
  0x32   : > { %1074 = vmatpush3.bf16.msra.mxu0 %v1116_v34 }
  0xe7   : > { %v1013_v41 = vpop.f32.mrb[0].mxu0 }
  0xe8   : > { %v398_v42 = vadd.f32 %v1013_v41, %v934_v40  ;;  %v389_v43 = vpop.f32.mrb[1].mxu0 }
  0xe9   : > { %v390_v44 = vadd.f32 %v934_v40, %v389_v43  ;;  %v1014_v45 = vpop.f32.mrb[2].mxu0 }
  0xea   : > { %v401_v46 = vadd.f32 %v1014_v45, %v934_v40  ;;  %v392_v47 = vpop.f32.mrb[3].mxu0  ;;  %v454_v49 = vmax.f32 %v398_v42, 0.0 }
  0xeb   : > { %v393_v48 = vadd.f32 %v934_v40, %v392_v47  ;;  %v452_v51 = vmax.f32 %v390_v44, 0.0 }
  0xec   : > { %v455_v50 = vmax.f32 %v401_v46, 0.0 }
  0xed   : > { %v453_v52 = vmax.f32 %v393_v48, 0.0 }
  0xee   : > { %v469_v53 = vpack.c.bf16 %v455_v50, %v454_v49 }
  0xef   : > { %v1017_v54 = vpop.f32.mrb[4].mxu0  ;;  %v468_v55 = vpack.c.bf16 %v453_v52, %v452_v51 }
  0xf0   : > { %v414_v56 = vadd.f32 %v1017_v54, %v934_v40  ;;  %v405_v57 = vpop.f32.mrb[5].mxu0 }
  0xf1   : > { %v406_v58 = vadd.f32 %v934_v40, %v405_v57  ;;  %v1018_v59 = vpop.f32.mrb[6].mxu0  ;;  %1043 = vmatprep.mubr.bf16.mxu1 %v468_v55 }
  0xf2   : > { %v417_v60 = vadd.f32 %v1018_v59, %v934_v40  ;;  %v408_v61 = vpop.f32.mrb[7].mxu0  ;;  %1044 = vmatmul.mubr.bf16.vlgmr.msra.gmra.mrb[0].mxu1 %v469_v53  ;;  %v458_v63 = vmax.f32 %v414_v56, 0.0 }
  0xf3   : > { %v409_v62 = vadd.f32 %v934_v40, %v408_v61  ;;  %v456_v1 = vmax.f32 %v406_v58, 0.0 }
  0xf4   : > { %v459_v0 = vmax.f32 %v417_v60, 0.0 }
  0xf5   : > { %v457_v2 = vmax.f32 %v409_v62, 0.0 }
  0xf6   : > { %v471_v3 = vpack.c.bf16 %v459_v0, %v458_v63 }
  0xf7   : > { %v470_v4 = vpack.c.bf16 %v457_v2, %v456_v1  ;;  %v1021_v5 = vpop.f32.mrb[8].mxu0 }
  0xf8   : > { %v430_v6 = vadd.f32 %v1021_v5, %v934_v40  ;;  %v421_v7 = vpop.f32.mrb[9].mxu0 }
  0xf9   : > { %v422_v8 = vadd.f32 %v934_v40, %v421_v7  ;;  %v1022_v9 = vpop.f32.mrb[10].mxu0  ;;  %1047 = vmatprep.mubr.bf16.mxu1 %v470_v4 }
  0xfa   : > { %v433_v10 = vadd.f32 %v1022_v9, %v934_v40  ;;  %v424_v11 = vpop.f32.mrb[11].mxu0  ;;  %1048 = vmatmul.mubr.bf16.gmra.mrb[4].mxu1 %v471_v3  ;;  %v462_v13 = vmax.f32 %v430_v6, 0.0 }
  0xfb   : > { %v425_v12 = vadd.f32 %v934_v40, %v424_v11  ;;  %v460_v15 = vmax.f32 %v422_v8, 0.0 }
  0xfc   : > { %v463_v14 = vmax.f32 %v433_v10, 0.0 }
  0xfd   : > { %v461_v16 = vmax.f32 %v425_v12, 0.0 }
  0xfe   : > { %v473_v17 = vpack.c.bf16 %v463_v14, %v462_v13 }
  0xff   : > { %v472_v18 = vpack.c.bf16 %v461_v16, %v460_v15  ;;  %v1025_v19 = vpop.f32.mrb[12].mxu0 }
 0x100   : > { %v446_v20 = vadd.f32 %v1025_v19, %v934_v40  ;;  %v437_v21 = vpop.f32.mrb[13].mxu0 }
 0x101   : > { %v438_v22 = vadd.f32 %v934_v40, %v437_v21  ;;  %v1026_v23 = vpop.f32.mrb[14].mxu0  ;;  %1051 = vmatprep.mubr.bf16.mxu1 %v472_v18 }
 0x102   : > { %v449_v24 = vadd.f32 %v1026_v23, %v934_v40  ;;  %v440_v25 = vpop.f32.mrb[15].mxu0  ;;  %1052 = vmatmul.mubr.bf16.gmra.mrb[8].mxu1 %v473_v17  ;;  %v466_v27 = vmax.f32 %v446_v20, 0.0 }
 0x103   : > { %v441_v26 = vadd.f32 %v934_v40, %v440_v25  ;;  %v464_v29 = vmax.f32 %v438_v22, 0.0 }
 0x104   : > { %v467_v28 = vmax.f32 %v449_v24, 0.0 }
 0x105   : > { %v465_v30 = vmax.f32 %v441_v26, 0.0 }
 0x106   : > { %v475_v31 = vpack.c.bf16 %v467_v28, %v466_v27  ;;  %v962_v28 = vld [vmem:[%s1318_s6] ss:$0 sm:$0xff] }
 0x107   : > { %v474_v32 = vpack.c.bf16 %v465_v30, %v464_v29 }
 0x109   : > { %1055 = vmatprep.mubr.bf16.mxu1 %v474_v32 }
 0x10a   : > { %1056 = vmatmul.mubr.bf16.gmra.mrb[12].mxu1 %v475_v31 }
 0x1c5   : > { %v1045_v36 = vpop.f32.mrb[0].mxu1 }
 0x1c6   : > { %v590_v37 = vadd.f32 %v1045_v36, %v945_v35  ;;  %v581_v38 = vpop.f32.mrb[1].mxu1 }
 0x1c7   : > { %v582_v39 = vadd.f32 %v945_v35, %v581_v38  ;;  %v1046_v40 = vpop.f32.mrb[2].mxu1 }
 0x1c8   : > { %v593_v41 = vadd.f32 %v1046_v40, %v945_v35  ;;  %v584_v42 = vpop.f32.mrb[3].mxu1  ;;  %v646_v44 = vmax.f32 %v590_v37, 0.0 }
 0x1c9   : > { %v585_v43 = vadd.f32 %v945_v35, %v584_v42  ;;  %v644_v46 = vmax.f32 %v582_v39, 0.0 }
 0x1ca   : > { %v647_v45 = vmax.f32 %v593_v41, 0.0 }
 0x1cb   : > { %v645_v47 = vmax.f32 %v585_v43, 0.0 }
 0x1cc   : > { %v661_v48 = vpack.c.bf16 %v647_v45, %v646_v44 }
 0x1cd   : > { %v660_v49 = vpack.c.bf16 %v645_v47, %v644_v46  ;;  %v1049_v50 = vpop.f32.mrb[4].mxu1 }
 0x1ce   : > { %v606_v51 = vadd.f32 %v1049_v50, %v945_v35  ;;  %v597_v52 = vpop.f32.mrb[5].mxu1 }
 0x1cf   : > { %v598_v53 = vadd.f32 %v945_v35, %v597_v52  ;;  %v1050_v54 = vpop.f32.mrb[6].mxu1  ;;  %1075 = vmatprep.mubr.bf16.mxu0 %v660_v49 }
 0x1d0   : > { %v609_v55 = vadd.f32 %v1050_v54, %v945_v35  ;;  %v600_v56 = vpop.f32.mrb[7].mxu1  ;;  %1076 = vmatmul.mubr.bf16.vlgmr.msra.gmra.mrb[16].mxu0 %v661_v48  ;;  %v650_v58 = vmax.f32 %v606_v51, 0.0 }
 0x1d1   : > { %v601_v57 = vadd.f32 %v945_v35, %v600_v56  ;;  %v648_v60 = vmax.f32 %v598_v53, 0.0 }
 0x1d2   : > { %v651_v59 = vmax.f32 %v609_v55, 0.0 }
 0x1d3   : > { %v649_v61 = vmax.f32 %v601_v57, 0.0 }
 0x1d4   : > { %v663_v62 = vpack.c.bf16 %v651_v59, %v650_v58 }
 0x1d5   : > { %v662_v63 = vpack.c.bf16 %v649_v61, %v648_v60  ;;  %v1053_v0 = vpop.f32.mrb[8].mxu1 }
 0x1d6   : > { %v622_v1 = vadd.f32 %v1053_v0, %v945_v35  ;;  %v613_v2 = vpop.f32.mrb[9].mxu1 }
 0x1d7   : > { %v614_v3 = vadd.f32 %v945_v35, %v613_v2  ;;  %v1054_v4 = vpop.f32.mrb[10].mxu1  ;;  %1079 = vmatprep.mubr.bf16.mxu0 %v662_v63 }
 0x1d8   : > { %v625_v5 = vadd.f32 %v1054_v4, %v945_v35  ;;  %v616_v6 = vpop.f32.mrb[11].mxu1  ;;  %1080 = vmatmul.mubr.bf16.gmra.mrb[20].mxu0 %v663_v62  ;;  %v654_v8 = vmax.f32 %v622_v1, 0.0 }
 0x1d9   : > { %v617_v7 = vadd.f32 %v945_v35, %v616_v6  ;;  %v652_v10 = vmax.f32 %v614_v3, 0.0 }
 0x1da   : > { %v655_v9 = vmax.f32 %v625_v5, 0.0 }
 0x1db   : > { %v653_v11 = vmax.f32 %v617_v7, 0.0 }
 0x1dc   : > { %v665_v12 = vpack.c.bf16 %v655_v9, %v654_v8 }
 0x1dd   : > { %v664_v13 = vpack.c.bf16 %v653_v11, %v652_v10  ;;  %v1057_v14 = vpop.f32.mrb[12].mxu1 }
 0x1de   : > { %v638_v15 = vadd.f32 %v1057_v14, %v945_v35  ;;  %v629_v16 = vpop.f32.mrb[13].mxu1 }
 0x1df   : > { %v630_v17 = vadd.f32 %v945_v35, %v629_v16  ;;  %v1058_v18 = vpop.f32.mrb[14].mxu1  ;;  %1083 = vmatprep.mubr.bf16.mxu0 %v664_v13 }
 0x1e0   : > { %v641_v19 = vadd.f32 %v1058_v18, %v945_v35  ;;  %v632_v20 = vpop.f32.mrb[15].mxu1  ;;  %1084 = vmatmul.mubr.bf16.gmra.mrb[24].mxu0 %v665_v12  ;;  %v658_v22 = vmax.f32 %v638_v15, 0.0 }
 0x1e1   : > { %v633_v21 = vadd.f32 %v945_v35, %v632_v20  ;;  %v656_v24 = vmax.f32 %v630_v17, 0.0 }
 0x1e2   : > { %v659_v23 = vmax.f32 %v641_v19, 0.0 }
 0x1e3   : > { %v657_v25 = vmax.f32 %v633_v21, 0.0 }
 0x1e4   : > { %v667_v26 = vpack.c.bf16 %v659_v23, %v658_v22 }
 0x1e5   : > { %v666_v27 = vpack.c.bf16 %v657_v25, %v656_v24 }
 0x1e7   : > { %1087 = vmatprep.mubr.bf16.mxu0 %v666_v27 }
 0x1e8   : > { %1088 = vmatmul.mubr.bf16.gmra.mrb[28].mxu0 %v667_v26 }
 0x2a3   : > { %v1077_v29 = vpop.f32.mrb[16].mxu0 }
 0x2a4   : > { %v838_v30 = vadd.f32 %v1077_v29, %v962_v28  ;;  %v766_v31 = vpop.f32.mrb[17].mxu0 }
 0x2a5   : > { %v836_v32 = vadd.f32 %v962_v28, %v766_v31  ;;  %v1078_v33 = vpop.f32.mrb[18].mxu0 }
 0x2a6   : > { %855 = vst.msk [vmem:[%s1275_s11 + $0x10] sm:$0xff] %vm852_vm1, %v838_v30  ;;  %v839_v34 = vadd.f32 %v1078_v33, %v962_v28  ;;  %v769_v35 = vpop.f32.mrb[19].mxu0 }
 0x2a7   : > { %853 = vst.msk [vmem:[%s1275_s11] sm:$0xff] %vm852_vm1, %v836_v32  ;;  %v837_v36 = vadd.f32 %v962_v28, %v769_v35 }
 0x2a8   : > { %856 = vst.msk [vmem:[%s1275_s11 + $0x18] sm:$0xff] %vm852_vm1, %v839_v34 }
 0x2a9   : > { %854 = vst.msk [vmem:[%s1275_s11 + $0x8] sm:$0xff] %vm852_vm1, %v837_v36 }
 0x2ab   : > { %v1081_v37 = vpop.f32.mrb[20].mxu0 }
 0x2ac   : > { %v842_v38 = vadd.f32 %v1081_v37, %v962_v28  ;;  %v782_v39 = vpop.f32.mrb[21].mxu0 }
 0x2ad   : > { %v840_v40 = vadd.f32 %v962_v28, %v782_v39  ;;  %v1082_v41 = vpop.f32.mrb[22].mxu0 }
 0x2ae   : > { %859 = vst.msk [vmem:[%s1275_s11 + $0x30] sm:$0xff] %vm852_vm1, %v842_v38  ;;  %v843_v42 = vadd.f32 %v1082_v41, %v962_v28  ;;  %v785_v43 = vpop.f32.mrb[23].mxu0 }
 0x2af   : > { %857 = vst.msk [vmem:[%s1275_s11 + $0x20] sm:$0xff] %vm852_vm1, %v840_v40  ;;  %v841_v44 = vadd.f32 %v962_v28, %v785_v43 }
 0x2b0   : > { %860 = vst.msk [vmem:[%s1275_s11 + $0x38] sm:$0xff] %vm852_vm1, %v843_v42 }
 0x2b1   : > { %858 = vst.msk [vmem:[%s1275_s11 + $0x28] sm:$0xff] %vm852_vm1, %v841_v44 }
 0x2b3   : > { %v1085_v45 = vpop.f32.mrb[24].mxu0 }
 0x2b4   : > { %v846_v46 = vadd.f32 %v1085_v45, %v962_v28  ;;  %v798_v47 = vpop.f32.mrb[25].mxu0 }
 0x2b5   : > { %v844_v48 = vadd.f32 %v962_v28, %v798_v47  ;;  %v1086_v49 = vpop.f32.mrb[26].mxu0 }
 0x2b6   : > { %863 = vst.msk [vmem:[%s1275_s11 + $0x50] sm:$0xff] %vm852_vm1, %v846_v46  ;;  %v847_v50 = vadd.f32 %v1086_v49, %v962_v28  ;;  %v801_v51 = vpop.f32.mrb[27].mxu0 }
 0x2b7   : > { %861 = vst.msk [vmem:[%s1275_s11 + $0x40] sm:$0xff] %vm852_vm1, %v844_v48  ;;  %v845_v52 = vadd.f32 %v962_v28, %v801_v51 }
 0x2b8   : > { %864 = vst.msk [vmem:[%s1275_s11 + $0x58] sm:$0xff] %vm852_vm1, %v847_v50 }
 0x2b9   : > { %862 = vst.msk [vmem:[%s1275_s11 + $0x48] sm:$0xff] %vm852_vm1, %v845_v52 }
 0x2bb   : > { %v1089_v53 = vpop.f32.mrb[28].mxu0 }
 0x2bc   : > { %v850_v54 = vadd.f32 %v1089_v53, %v962_v28  ;;  %v814_v55 = vpop.f32.mrb[29].mxu0 }
 0x2bd   : > { %v848_v56 = vadd.f32 %v962_v28, %v814_v55  ;;  %v1090_v57 = vpop.f32.mrb[30].mxu0 }
 0x2be   : > { %867 = vst.msk [vmem:[%s1275_s11 + $0x70] sm:$0xff] %vm852_vm1, %v850_v54  ;;  %v851_v58 = vadd.f32 %v1090_v57, %v962_v28  ;;  %v817_v59 = vpop.f32.mrb[31].mxu0 }
 0x2bf   : > { %865 = vst.msk [vmem:[%s1275_s11 + $0x60] sm:$0xff] %vm852_vm1, %v848_v56  ;;  %v849_v60 = vadd.f32 %v962_v28, %v817_v59 }
 0x2c0   : > { %868 = vst.msk [vmem:[%s1275_s11 + $0x78] sm:$0xff] %vm852_vm1, %v851_v58 }
 0x2c1   : > { %866 = vst.msk [vmem:[%s1275_s11 + $0x68] sm:$0xff] %vm852_vm1, %v849_v60 }
 0x2c2 PF: > { %s17_s24 = sadd.s32 1, %s1123_s24  }
 0x2c3   : > { %p14_p4 = scmp.ge.s32.totalorder %s17_s24, 6  }
 0x2c5   :  { %16 = sbr.rel (!%p14_p4) target bundleno = 1 (0x1), region = 78 }

</bundles_post_ra>
